<compile_context>
chip_gen: v7x
topology: tpu7x:2x2x1
jax: 0.10.0
libtpu: 0.0.40
codegen_flags: <defaults>
</compile_context>

<pallas_src>
import functools

import jax
import jax.numpy as jnp
from jax.experimental import pallas as pl
from jax.experimental.pallas import tpu as pltpu


# ---------------------------------------------------------------------------
# Kernel
# ---------------------------------------------------------------------------
def _ace_kernel(x_ref, w1_ref, b1_ref, w2_ref, b2_ref, w3_ref, b3_ref, o_ref,
                *, compute_dtype, precision):
    """Fused 3x (1x1 conv + ReLU) on one (Bt, C, pixel-tile) slab.

    x_ref : (Bt, C_in, TP)   stored dtype; cast to compute_dtype in-kernel
    w*_ref: (C_out, C_prev)  pre-cast to compute_dtype (tiny, VMEM-resident)
    b*_ref: (C_out, 1)       f32, broadcast along the lane (pixel) axis
    o_ref : (Bt, C_out, TP)
    """
    w1 = w1_ref[...]
    b1 = b1_ref[...]
    w2 = w2_ref[...]
    b2 = b2_ref[...]
    w3 = w3_ref[...]
    b3 = b3_ref[...]

    bt = x_ref.shape[0]
    for b in range(bt):  # static & small (<= 8): fully unrolled
        # In-kernel cast: x makes exactly one HBM pass in its stored dtype.
        x = x_ref[b].astype(compute_dtype)

        h = jnp.dot(w1, x, preferred_element_type=jnp.float32,
                    precision=precision)
        h = jnp.maximum(h + b1, 0.0)

        h = jnp.dot(w2, h.astype(compute_dtype),
                    preferred_element_type=jnp.float32, precision=precision)
        h = jnp.maximum(h + b2, 0.0)

        h = jnp.dot(w3, h.astype(compute_dtype),
                    preferred_element_type=jnp.float32, precision=precision)
        h = jnp.maximum(h + b3, 0.0)

        o_ref[b] = h.astype(o_ref.dtype)


# ---------------------------------------------------------------------------
# Generation-aware tiling
# ---------------------------------------------------------------------------
def _cdiv(a, b):
    return -(-a // b)


def _round_up(v, m):
    return _cdiv(v, m) * m


def _largest_divisor_leq(n, k):
    k = max(1, min(n, k))
    for d in range(k, 0, -1):
        if n % d == 0:
            return d
    return 1


def _vmem_capacity_bytes():
    """Best-effort VMEM capacity query; conservative (v7x per-TC) fallback."""
    try:
        info = pltpu.get_tpu_info()
        for attr in ("vmem_capacity_bytes", "vmem_size_bytes", "vmem_bytes"):
            cap = getattr(info, attr, None)
            if cap:
                return int(cap)
    except Exception:
        pass
    return 64 * 1024 * 1024


def _choose_tiling(n, c_in, c_out, hw, x_itemsize, out_itemsize):
    """Pick (batch-per-step, pixel-tile, vmem_limit) for this generation."""
    vmem_cap = _vmem_capacity_bytes()
    if vmem_cap >= 100 * 1024 * 1024:           # v5e / v6e: 128 MiB VMEM
        budget, max_tile, vmem_limit = 72 << 20, 32768, 96 << 20
    else:                                        # v7x: 64 MiB per TensorCore
        budget, max_tile, vmem_limit = 24 << 20, 8192, 48 << 20

    # Per-pixel VMEM: double-buffered input+output tiles plus ~3 f32
    # intermediates materialized by the chained dots (single-buffered).
    per_pixel = 2 * (c_in * x_itemsize + c_out * out_itemsize) + 3 * c_out * 4
    max_px = max(128, (budget // per_pixel) // 128 * 128)

    if hw < 2048 and hw <= max_px:
        # Small image: take the full pixel extent per step (block last dim ==
        # full array dim, so any hw is legal) and fold several images/step.
        tile_p = hw
        bt = _largest_divisor_leq(n, min(8, max_px // max(hw, 1)))
    else:
        # Large image: one image slice per step, tile over pixels with
        # 128-aligned tiles that never exceed the pixel extent.
        bt = 1
        tile_p = min(max_px, max_tile)
        tile_p = min(tile_p, max(256, (hw // 256) * 256))
        tile_p = max(128, (tile_p // 128) * 128)

    # Make sure the grid has >= 2 steps so v7x's two TensorCores both get
    # work (negligible cost on single-core chips).
    steps = (n // bt) * _cdiv(hw, tile_p)
    if steps < 2:
        if n >= 2 and bt >= 2:
            bt = _largest_divisor_leq(n, n // 2)
        elif hw >= 256:
            tile_p = _round_up(_cdiv(hw, 2), 128)

    return bt, int(tile_p), int(vmem_limit)


# ---------------------------------------------------------------------------
# Wrapper
# ---------------------------------------------------------------------------
@functools.partial(jax.jit,
                   static_argnames=("compute_dtype", "out_dtype", "precision"))
def ace_block(x_nchw, w1, b1, w2, b2, w3, b3, *,
              compute_dtype=jnp.bfloat16, out_dtype=None, precision=None):
    """ACEBlock forward: relu(conv3(relu(conv2(relu(conv1(x)))))), all 1x1.

    x_nchw : (N, C_in, H, W)
    w1     : (C_head, C_in)   (PyTorch conv weight (O, I, 1, 1) squeezed)
    b1     : (C_head,)        ;  w2/b2, w3/b3 analogous (C_head -> C_head)

    compute_dtype : MXU input dtype. Default jnp.bfloat16 — recommended on
        v5e, v6e and v7x alike (bf16 inputs, f32 accumulation, f32 bias+ReLU;
        abs error ~1e-3 at unit scale). Use jnp.float32 for near-exact results.
    out_dtype     : stored output dtype (default: x's dtype). jnp.bfloat16
        halves the HBM write traffic when downstream ops accept it.
    precision     : optional jax.lax.Precision forwarded to the in-kernel dots
        (e.g. jax.lax.Precision.HIGHEST with compute_dtype=float32 for the
        strictest f32 matmul path).

    Returns (N, C_head, H, W) in out_dtype.
    """
    n, c_in, hh, ww = x_nchw.shape
    c_out = w1.shape[0]
    hw = hh * ww
    cdt = jnp.dtype(compute_dtype)
    odt = jnp.dtype(out_dtype) if out_dtype is not None else x_nchw.dtype

    # Native-layout view: (N, C, H, W) -> (N, C, H*W) is a free reshape.
    # NOTE: no .astype here — the activation tile is cast in-kernel, so the
    # stored tensor makes exactly one HBM pass.
    x3 = x_nchw.reshape(n, c_in, hw)

    # Only the tiny weights are pre-cast (DMA'd once, VMEM-resident).
    # Biases stay f32: they are added to the f32 accumulator before ReLU.
    w1c = w1.astype(cdt)
    w2c = w2.astype(cdt)
    w3c = w3.astype(cdt)
    b1c = b1.astype(jnp.float32).reshape(c_out, 1)
    b2c = b2.astype(jnp.float32).reshape(c_out, 1)
    b3c = b3.astype(jnp.float32).reshape(c_out, 1)

    bt, tile_p, vmem_limit = _choose_tiling(
        n, c_in, c_out, hw, jnp.dtype(x_nchw.dtype).itemsize, odt.itemsize)

    grid = (n // bt, _cdiv(hw, tile_p))

    # Weights/biases: constant block index across the whole grid -> fetched
    # once, resident in VMEM, no per-step re-DMA.
    const = lambda i, p: (0, 0)

    kernel = functools.partial(_ace_kernel, compute_dtype=cdt,
                               precision=precision)

    out3 = pl.pallas_call(
        kernel,
        out_shape=jax.ShapeDtypeStruct((n, c_out, hw), odt),
        grid_spec=pltpu.PrefetchScalarGridSpec(
            num_scalar_prefetch=0,
            grid=grid,
            in_specs=[
                pl.BlockSpec((bt, c_in, tile_p), lambda i, p: (i, 0, p)),
                pl.BlockSpec((c_out, c_in), const),
                pl.BlockSpec((c_out, 1), const),
                pl.BlockSpec((c_out, c_out), const),
                pl.BlockSpec((c_out, 1), const),
                pl.BlockSpec((c_out, c_out), const),
                pl.BlockSpec((c_out, 1), const),
            ],
            out_specs=pl.BlockSpec((bt, c_out, tile_p), lambda i, p: (i, 0, p)),
        ),
        compiler_params=pltpu.CompilerParams(
            dimension_semantics=("parallel", "parallel"),
            vmem_limit_bytes=vmem_limit,
        ),
    )(x3, w1c, b1c, w2c, b2c, w3c, b3c)

    # (N, C_out, H*W) -> (N, C_out, H, W): free reshape, no transpose.
    return out3.reshape(n, c_out, hh, ww)


# ---------------------------------------------------------------------------
# Reference & test
# ---------------------------------------------------------------------------
def _reference(x_nchw, w1, b1, w2, b2, w3, b3):
    """Plain-JAX reference matching PyTorch 1x1 conv + ReLU semantics."""
    def conv1x1(x, w, b):
        y = jnp.einsum("nchw,oc->nohw", x, w) + b[None, :, None, None]
        return jax.nn.relu(y)

    h = conv1x1(x_nchw, w1, b1)
    h = conv1x1(h, w2, b2)
    return conv1x1(h, w3, b3)


def _make_params(key, c_in, c_head):
    k1, k2, k3, k4, k5, k6 = jax.random.split(key, 6)
    w1 = jax.random.normal(k1, (c_head, c_in), jnp.float32) * 0.05
    b1 = jax.random.normal(k2, (c_head,), jnp.float32) * 0.05
    w2 = jax.random.normal(k3, (c_head, c_head), jnp.float32) * 0.05
    b2 = jax.random.normal(k4, (c_head,), jnp.float32) * 0.05
    w3 = jax.random.normal(k5, (c_head, c_head), jnp.float32) * 0.05
    b3 = jax.random.normal(k6, (c_head,), jnp.float32) * 0.05
    return w1, b1, w2, b2, w3, b3


if __name__ == "__main__":
    key = jax.random.PRNGKey(0)

    # Case A: batch=2, C_in=32 -> C_head=64, 16x16 image.
    kx, kp, key = jax.random.split(key, 3)
    x = jax.random.normal(kx, (2, 32, 16, 16), dtype=jnp.float32)
    params = _make_params(kp, 32, 64)
    ref = _reference(x, *params)

    # Default (recommended) path: bf16 MXU inputs, f32 accumulation.
    out_bf16 = jax.block_until_ready(ace_block(x, *params))
    assert out_bf16.shape == (2, 64, 16, 16)
    assert jnp.allclose(out_bf16, ref, atol=3e-2, rtol=3e-2)

    # f32 compute path (near-exact; matmul precision documented above).
    out_f32 = jax.block_until_ready(
        ace_block(x, *params, compute_dtype=jnp.float32))
    assert jnp.allclose(out_f32, ref, atol=1e-4, rtol=1e-4)

    # bf16 stored output (halves HBM write traffic).
    out_lo = jax.block_until_ready(
        ace_block(x, *params, out_dtype=jnp.bfloat16))
    assert out_lo.dtype == jnp.bfloat16
    assert jnp.allclose(out_lo.astype(jnp.float32), ref, atol=3e-2, rtol=3e-2)

    # Case B: batch=4, C_in=16 -> C_head=32, 8x8 image — exercises the
    # multi-image-per-grid-step path (static in-kernel batch loop).
    kx2, kp2, key = jax.random.split(key, 3)
    x2 = jax.random.normal(kx2, (4, 16, 8, 8), dtype=jnp.float32)
    params2 = _make_params(kp2, 16, 32)
    ref2 = _reference(x2, *params2)
    out2 = jax.block_until_ready(ace_block(x2, *params2))
    assert out2.shape == (4, 32, 8, 8)
    assert jnp.allclose(out2, ref2, atol=3e-2, rtol=3e-2)

    print("KERNEL_OK")
</pallas_src>

<mosaic_0001>
module attributes {stable_mosaic.version = 11 : i64} {
  func.func @_ace_kernel(%arg0: i32, %arg1: i32, %arg2: memref<1x32x256xf32, #tpu.memory_space<vmem>>, %arg3: memref<64x32xbf16, #tpu.memory_space<vmem>>, %arg4: memref<64x1xf32, #tpu.memory_space<vmem>>, %arg5: memref<64x64xbf16, #tpu.memory_space<vmem>>, %arg6: memref<64x1xf32, #tpu.memory_space<vmem>>, %arg7: memref<64x64xbf16, #tpu.memory_space<vmem>>, %arg8: memref<64x1xf32, #tpu.memory_space<vmem>>, %arg9: memref<1x64x256xf32, #tpu.memory_space<vmem>>) attributes {dimension_semantics = [#tpu.dimension_semantics<parallel>, #tpu.dimension_semantics<parallel>], iteration_bounds = array<i64: 2, 1>, scalar_prefetch = 0 : i64, scratch_operands = 0 : i64, tpu.core_type = #tpu.core_type<tc>, window_params = [{transform_indices = @transform_0, window_bounds = array<i64: 1, 32, 256>}, {pipeline_mode = #tpu.pipeline_mode<synchronous>, transform_indices = @transform_1, window_bounds = array<i64: 64, 32>}, {pipeline_mode = #tpu.pipeline_mode<synchronous>, transform_indices = @transform_2, window_bounds = array<i64: 64, 1>}, {pipeline_mode = #tpu.pipeline_mode<synchronous>, transform_indices = @transform_3, window_bounds = array<i64: 64, 64>}, {pipeline_mode = #tpu.pipeline_mode<synchronous>, transform_indices = @transform_4, window_bounds = array<i64: 64, 1>}, {pipeline_mode = #tpu.pipeline_mode<synchronous>, transform_indices = @transform_5, window_bounds = array<i64: 64, 64>}, {pipeline_mode = #tpu.pipeline_mode<synchronous>, transform_indices = @transform_6, window_bounds = array<i64: 64, 1>}, {transform_indices = @transform_7, window_bounds = array<i64: 1, 64, 256>}]} {
    %c0 = arith.constant 0 : index
    %c0_0 = arith.constant 0 : index
    %0 = vector.load %arg3[%c0, %c0_0] : memref<64x32xbf16, #tpu.memory_space<vmem>>, vector<64x32xbf16>
    %c0_1 = arith.constant 0 : index
    %c0_2 = arith.constant 0 : index
    %1 = vector.load %arg4[%c0_1, %c0_2] : memref<64x1xf32, #tpu.memory_space<vmem>>, vector<64x1xf32>
    %c0_3 = arith.constant 0 : index
    %c0_4 = arith.constant 0 : index
    %2 = vector.load %arg5[%c0_3, %c0_4] : memref<64x64xbf16, #tpu.memory_space<vmem>>, vector<64x64xbf16>
    %c0_5 = arith.constant 0 : index
    %c0_6 = arith.constant 0 : index
    %3 = vector.load %arg6[%c0_5, %c0_6] : memref<64x1xf32, #tpu.memory_space<vmem>>, vector<64x1xf32>
    %c0_7 = arith.constant 0 : index
    %c0_8 = arith.constant 0 : index
    %4 = vector.load %arg7[%c0_7, %c0_8] : memref<64x64xbf16, #tpu.memory_space<vmem>>, vector<64x64xbf16>
    %c0_9 = arith.constant 0 : index
    %c0_10 = arith.constant 0 : index
    %5 = vector.load %arg8[%c0_9, %c0_10] : memref<64x1xf32, #tpu.memory_space<vmem>>, vector<64x1xf32>
    %c0_11 = arith.constant 0 : index
    %c0_12 = arith.constant 0 : index
    %c0_13 = arith.constant 0 : index
    %6 = vector.load %arg2[%c0_11, %c0_12, %c0_13] : memref<1x32x256xf32, #tpu.memory_space<vmem>>, vector<1x32x256xf32>
    %7 = vector.shape_cast %6 : vector<1x32x256xf32> to vector<32x256xf32>
    %8 = arith.truncf %7 : vector<32x256xf32> to vector<32x256xbf16>
    %cst = arith.constant dense<0.000000e+00> : vector<64x256xf32>
    %9 = tpu.matmul %0, %8, %cst {dimension_numbers = #tpu.dot_dimension_numbers<[1], [0], [0], [1], [0, 0, 1, 1], [], []>} : vector<64x32xbf16>, vector<32x256xbf16>, vector<64x256xf32> -> vector<64x256xf32>
    %10 = vector.broadcast %1 : vector<64x1xf32> to vector<64x256xf32>
    %11 = arith.addf %9, %10 : vector<64x256xf32>
    %cst_14 = arith.constant 0.000000e+00 : f32
    %12 = vector.broadcast %cst_14 : f32 to vector<64x256xf32>
    %13 = arith.maximumf %11, %12 : vector<64x256xf32>
    %14 = arith.truncf %13 : vector<64x256xf32> to vector<64x256xbf16>
    %cst_15 = arith.constant dense<0.000000e+00> : vector<64x256xf32>
    %15 = tpu.matmul %2, %14, %cst_15 {dimension_numbers = #tpu.dot_dimension_numbers<[1], [0], [0], [1], [0, 0, 1, 1], [], []>} : vector<64x64xbf16>, vector<64x256xbf16>, vector<64x256xf32> -> vector<64x256xf32>
    %16 = vector.broadcast %3 : vector<64x1xf32> to vector<64x256xf32>
    %17 = arith.addf %15, %16 : vector<64x256xf32>
    %cst_16 = arith.constant 0.000000e+00 : f32
    %18 = vector.broadcast %cst_16 : f32 to vector<64x256xf32>
    %19 = arith.maximumf %17, %18 : vector<64x256xf32>
    %20 = arith.truncf %19 : vector<64x256xf32> to vector<64x256xbf16>
    %cst_17 = arith.constant dense<0.000000e+00> : vector<64x256xf32>
    %21 = tpu.matmul %4, %20, %cst_17 {dimension_numbers = #tpu.dot_dimension_numbers<[1], [0], [0], [1], [0, 0, 1, 1], [], []>} : vector<64x64xbf16>, vector<64x256xbf16>, vector<64x256xf32> -> vector<64x256xf32>
    %22 = vector.broadcast %5 : vector<64x1xf32> to vector<64x256xf32>
    %23 = arith.addf %21, %22 : vector<64x256xf32>
    %cst_18 = arith.constant 0.000000e+00 : f32
    %24 = vector.broadcast %cst_18 : f32 to vector<64x256xf32>
    %25 = arith.maximumf %23, %24 : vector<64x256xf32>
    %c0_19 = arith.constant 0 : index
    %c0_20 = arith.constant 0 : index
    %c0_21 = arith.constant 0 : index
    %26 = vector.load %arg9[%c0_19, %c0_20, %c0_21] : memref<1x64x256xf32, #tpu.memory_space<vmem>>, vector<1x64x256xf32>
    %27 = vector.shape_cast %26 : vector<1x64x256xf32> to vector<64x256xf32>
    %28 = vector.shape_cast %25 : vector<64x256xf32> to vector<1x64x256xf32>
    tpu.vector_store %arg9[%c0_19, %c0_20, %c0_21], %28 {strides = array<i32>} : memref<1x64x256xf32, #tpu.memory_space<vmem>>, vector<1x64x256xf32>,
    return
  }
  func.func @transform_0(%arg0: i32, %arg1: i32) -> (i32, i32, i32) {
    %c0_i32 = arith.constant 0 : i32
    %c0_i32_0 = arith.constant 0 : i32
    return %arg0, %c0_i32, %arg1 : i32, i32, i32
  }
  func.func @transform_1(%arg0: i32, %arg1: i32) -> (i32, i32) {
    %c0_i32 = arith.constant 0 : i32
    %c0_i32_0 = arith.constant 0 : i32
    %c0_i32_1 = arith.constant 0 : i32
    return %c0_i32, %c0_i32_0 : i32, i32
  }
  func.func @transform_2(%arg0: i32, %arg1: i32) -> (i32, i32) {
    %c0_i32 = arith.constant 0 : i32
    %c0_i32_0 = arith.constant 0 : i32
    %c0_i32_1 = arith.constant 0 : i32
    return %c0_i32, %c0_i32_0 : i32, i32
  }
  func.func @transform_3(%arg0: i32, %arg1: i32) -> (i32, i32) {
    %c0_i32 = arith.constant 0 : i32
    %c0_i32_0 = arith.constant 0 : i32
    %c0_i32_1 = arith.constant 0 : i32
    return %c0_i32, %c0_i32_0 : i32, i32
  }
  func.func @transform_4(%arg0: i32, %arg1: i32) -> (i32, i32) {
    %c0_i32 = arith.constant 0 : i32
    %c0_i32_0 = arith.constant 0 : i32
    %c0_i32_1 = arith.constant 0 : i32
    return %c0_i32, %c0_i32_0 : i32, i32
  }
  func.func @transform_5(%arg0: i32, %arg1: i32) -> (i32, i32) {
    %c0_i32 = arith.constant 0 : i32
    %c0_i32_0 = arith.constant 0 : i32
    %c0_i32_1 = arith.constant 0 : i32
    return %c0_i32, %c0_i32_0 : i32, i32
  }
  func.func @transform_6(%arg0: i32, %arg1: i32) -> (i32, i32) {
    %c0_i32 = arith.constant 0 : i32
    %c0_i32_0 = arith.constant 0 : i32
    %c0_i32_1 = arith.constant 0 : i32
    return %c0_i32, %c0_i32_0 : i32, i32
  }
  func.func @transform_7(%arg0: i32, %arg1: i32) -> (i32, i32, i32) {
    %c0_i32 = arith.constant 0 : i32
    %c0_i32_0 = arith.constant 0 : i32
    return %arg0, %c0_i32, %arg1 : i32, i32, i32
  }
}

</mosaic_0001>

<bundles_post_ra>
// kernel: ace_block.1
= control target key start
LH: loop header
LB: loop body
LE: loop exit
PB: predicated region body
PF: predicated region fallthrough
CT: control target
= control target key end

     0   :  { %s1128_s24 = smov 0   ;;  %s1130_s25 = smov 0   ;;  %s1317_s0 = inlined_call_operand.vmem [shape: f32[2,32,256], index: 0, kind: input, shape index: {}]   ;;  %s1318_s1 = inlined_call_operand.vmem [shape: bf16[64,32], index: 1, kind: input, shape index: {}]   ;;  %s1319_s2 = inlined_call_operand.vmem [shape: f32[64,1], index: 2, kind: input, shape index: {}]   ;;  %s1320_s3 = inlined_call_operand.vmem [shape: bf16[64,64], index: 3, kind: input, shape index: {}]   ;;  %s1321_s4 = inlined_call_operand.vmem [shape: f32[64,1], index: 4, kind: input, shape index: {}]   ;;  %s1322_s5 = inlined_call_operand.vmem [shape: bf16[64,64], index: 5, kind: input, shape index: {}]   ;;  %s1323_s6 = inlined_call_operand.vmem [shape: f32[64,1], index: 6, kind: input, shape index: {}]   ;;  %s1324_s7 = inlined_call_operand.vmem [shape: f32[2,64,256], index: 7, kind: output, shape index: {}]  }
   0x1   :  { %s1132_s26 = smov 0  }
   0x2 LB: > { %s29_s27 = sadd.s32 1, %s1081_s25  ;;  %p987_p0 = scmp.ge.s32.totalorder %s1085_s26, 1  ;;  %s1085_s26 = sphi %s1132_s26, %s17_s26   ;;  %s1081_s25 = sphi %s1130_s25, %s1326_s25   ;;  %s1077_s24 = sphi %s1128_s24, %s1325_s24  }
   0x3   : > { %p31_p1 = scmp.ge.s32.totalorder %s29_s27, 2  ;;  %p258_p2 = scmp.lt.s32.totalorder %s1085_s26, 3 }
   0x5   : > { %s1328_s27 = smov (%p31_p1, %s29_s27), 0  ;;  %p259_p3 = pnand %p987_p0, %p258_p2 }
   0x6   : > { %p299_p4 = scmp.lt.s32.totalorder (!%p259_p3), %s1077_s24, 1  ;;  %v1087_v0 = vmov (!%p259_p3), 0   ;;  %v327_v1 = vld [vmem:[%s1319_s2] sm:$0xff] (!%p259_p3)  ;;  %v329_v2 = vld [vmem:[%s1319_s2 + $0x10] sm:$0xff] (!%p259_p3)  ;;  %v328_v14 = vld [vmem:[%s1319_s2 + $0x8] sm:$0xff] (!%p259_p3)  ;;  %vm439_vm0 = vcmask (!%p259_p3), 261120  }
   0x7   : > { %262 = sbr.rel (%p259_p3) target bundleno = 762 (0x2fa), region = 48  ;;  %484 = vmatprep.mubr.bf16.mxu0 (!%p259_p3), %v1087_v0  ;;  %504 = vmatprep.mubr.bf16.mxu1 (!%p259_p3), %v1087_v0  ;;  %v330_v15 = vld [vmem:[%s1319_s2 + $0x18] sm:$0xff] (!%p259_p3)  ;;  %v1051_v17 = vld [vmem:[%s1318_s1] sm:$0xff] (!%p259_p3)   ;;  %v1052_v18 = vld [vmem:[%s1318_s1 + $0x10] sm:$0xff] (!%p259_p3)   ;;  %vm609_vm1 = vcmask (!%p259_p3), 523264  }
   0x8   : > { %1049 = vset.pattern.permute.xlu0 (!%p259_p3), %v1087_v0  ;;  %1050 = vset.pattern.permute.xlu1 (!%p259_p3), %v1087_v0  ;;  %v331_v19 = vld [vmem:[%s1319_s2 + $0x20] sm:$0xff] (!%p259_p3)  ;;  %v332_v20 = vld [vmem:[%s1319_s2 + $0x28] sm:$0xff] (!%p259_p3)  ;;  %v333_v21 = vld [vmem:[%s1319_s2 + $0x30] sm:$0xff] (!%p259_p3) }
   0x9   : > { %381 = vperm.xlu0 (!%p259_p3), %1049, %v327_v1   ;;  %391 = vperm.xlu1 (!%p259_p3), %1050, %v329_v2   ;;  %v334_v22 = vld [vmem:[%s1319_s2 + $0x38] sm:$0xff] (!%p259_p3)  ;;  %v1053_v23 = vld [vmem:[%s1318_s1 + $0x8] sm:$0xff] (!%p259_p3)   ;;  %v343_v25 = vld [vmem:[%s1321_s4] sm:$0xff] (!%p259_p3) }
   0xa   : > { %v1054_v24 = vld [vmem:[%s1318_s1 + $0x18] sm:$0xff] (!%p259_p3)   ;;  %v344_v26 = vld [vmem:[%s1321_s4 + $0x8] sm:$0xff] (!%p259_p3)  ;;  %v345_v27 = vld [vmem:[%s1321_s4 + $0x10] sm:$0xff] (!%p259_p3) }
   0xb   : > { %v346_v28 = vld [vmem:[%s1321_s4 + $0x18] sm:$0xff] (!%p259_p3)  ;;  %v347_v29 = vld [vmem:[%s1321_s4 + $0x20] sm:$0xff] (!%p259_p3)  ;;  %v348_v30 = vld [vmem:[%s1321_s4 + $0x28] sm:$0xff] (!%p259_p3) }
   0xc   : > { %v349_v31 = vld [vmem:[%s1321_s4 + $0x30] sm:$0xff] (!%p259_p3)  ;;  %v350_v32 = vld [vmem:[%s1321_s4 + $0x38] sm:$0xff] (!%p259_p3)  ;;  %v359_v33 = vld [vmem:[%s1323_s6] sm:$0xff] (!%p259_p3) }
   0xd   : > { %386 = vperm.xlu0 (!%p259_p3), %1049, %v328_v14   ;;  %396 = vperm.xlu1 (!%p259_p3), %1050, %v330_v15   ;;  %v360_v34 = vld [vmem:[%s1323_s6 + $0x8] sm:$0xff] (!%p259_p3)  ;;  %v361_v35 = vld [vmem:[%s1323_s6 + $0x10] sm:$0xff] (!%p259_p3)  ;;  %v362_v36 = vld [vmem:[%s1323_s6 + $0x18] sm:$0xff] (!%p259_p3) }
   0xe   : > { %s1330_s24 = smov (!%p299_p4, %s1077_s24), 1  ;;  %v363_v37 = vld [vmem:[%s1323_s6 + $0x20] sm:$0xff]  ;;  %v364_v38 = vld [vmem:[%s1323_s6 + $0x28] sm:$0xff]  ;;  %v365_v39 = vld [vmem:[%s1323_s6 + $0x30] sm:$0xff] }
   0xf   : > { %s1018_s28 = sshll.u32 %s1330_s24, 6  ;;  %v366_v40 = vld [vmem:[%s1323_s6 + $0x38] sm:$0xff] }
  0x10   : > { %s306_s12 = scalar_lea.vmem %s1317_s0, %s1018_s28  ;;  %s1019_s28 = sshll.u32 %s1330_s24, 7 }
  0x11   : > { %v368_v3 = vld [vmem:[%s306_s12 + $0x8] sm:$0xff]  ;;  %v370_v4 = vld [vmem:[%s306_s12 + $0x18] sm:$0xff]  ;;  %v367_v5 = vld [vmem:[%s306_s12] sm:$0xff]  ;;  %401 = vperm.xlu0 %1049, %v331_v19   ;;  %406 = vperm.xlu1 %1050, %v332_v20   ;;  %s1290_s8 = scalar_lea.vmem %s1324_s7, %s1019_s28 }
  0x12   : > { %v376_v6 = vpack.c.bf16 %v370_v4, %v368_v3  ;;  %v369_v7 = vld [vmem:[%s306_s12 + $0x10] sm:$0xff]  ;;  %v372_v8 = vld [vmem:[%s306_s12 + $0x28] sm:$0xff]  ;;  %v374_v9 = vld [vmem:[%s306_s12 + $0x38] sm:$0xff] }
  0x13   : > { %v375_v10 = vpack.c.bf16 %v369_v7, %v367_v5  ;;  %v378_v11 = vpack.c.bf16 %v374_v9, %v372_v8  ;;  %v371_v12 = vld [vmem:[%s306_s12 + $0x20] sm:$0xff]  ;;  %v373_v13 = vld [vmem:[%s306_s12 + $0x30] sm:$0xff] }
  0x14   : > { %452 = vmatprep.subr.bf16.mxu0 %v376_v6  ;;  %1020 = vmatprep.subr.bf16.mxu1 %v376_v6  ;;  %v377_v16 = vpack.c.bf16 %v373_v13, %v371_v12 }
  0x15   : > { %453 = vmatpush1.bf16.msra.mxu0 %v375_v10  ;;  %1022 = vmatpush1.bf16.msra.mxu1 %v375_v10 }
  0x16   : > { %454 = vmatprep.subr.bf16.mxu0 %v378_v11  ;;  %1021 = vmatprep.subr.bf16.mxu1 %v378_v11 }
  0x17   : > { %411 = vperm.xlu0 %1049, %v333_v21   ;;  %416 = vperm.xlu1 %1050, %v334_v22  }
  0x19   : > { %455 = vmatpush1.bf16.msra.mxu0 %v377_v16  ;;  %1023 = vmatpush1.bf16.msra.mxu1 %v377_v16 }
  0x1b   : > { %551 = vperm.xlu0 %1049, %v343_v25   ;;  %556 = vperm.xlu1 %1050, %v344_v26  }
  0x1c   : > { %996 = vmatmul.mubr.msk.bf16.vlgmr.msra.gmra.mrb[0].mxu0 %vm439_vm0, %v1051_v17  ;;  %998 = vmatmul.mubr.msk.bf16.vlgmr.msra.gmra.mrb[0].mxu1 %vm439_vm0, %v1052_v18 }
  0x1d   : > { %494 = vmatprep.mubr.bf16.mxu0 %v1087_v0  ;;  %514 = vmatprep.mubr.bf16.mxu1 %v1087_v0 }
  0x1f   : > { %561 = vperm.xlu0 %1049, %v345_v27   ;;  %566 = vperm.xlu1 %1050, %v346_v28  }
  0x23   : > { %571 = vperm.xlu0 %1049, %v347_v29   ;;  %576 = vperm.xlu1 %1050, %v348_v30  }
  0x24   : > { %997 = vmatmul.mubr.msk.bf16.gmra.mrb[4].mxu0 %vm439_vm0, %v1053_v23  ;;  %999 = vmatmul.mubr.msk.bf16.gmra.mrb[4].mxu1 %vm439_vm0, %v1054_v24 }
  0x25   : > { %654 = vmatprep.mubr.bf16.mxu1 %v1087_v0  ;;  %823 = vmatprep.mubr.bf16.mxu0 %v1087_v0 }
  0x27   : > { %581 = vperm.xlu0 %1049, %v349_v31   ;;  %586 = vperm.xlu1 %1050, %v350_v32  }
  0x2b   : > { %721 = vperm.xlu0 %1049, %v359_v33   ;;  %726 = vperm.xlu1 %1050, %v360_v34  }
  0x2f   : > { %731 = vperm.xlu0 %1049, %v361_v35   ;;  %736 = vperm.xlu1 %1050, %v362_v36  }
  0x33   : > { %741 = vperm.xlu0 %1049, %v363_v37   ;;  %746 = vperm.xlu1 %1050, %v364_v38  }
  0x37   : > { %751 = vperm.xlu0 %1049, %v365_v39   ;;  %756 = vperm.xlu1 %1050, %v366_v40  }
  0x88   : > { %v382_v41 = vpop.permute.xlu0 %381  ;;  %v392_v42 = vpop.permute.xlu1 %391 }
  0x8c   : > { %v387_v43 = vpop.permute.xlu0 %386  ;;  %v397_v44 = vpop.permute.xlu1 %396 }
  0x90   : > { %v402_v45 = vpop.permute.xlu0 %401  ;;  %v407_v46 = vpop.permute.xlu1 %406 }
  0x96   : > { %v412_v8 = vpop.permute.xlu0 %411  ;;  %v417_v9 = vpop.permute.xlu1 %416 }
  0xef   : > { %v486_v47 = vpop.f32.mrb[0].mxu0  ;;  %v506_v48 = vpop.f32.mrb[0].mxu1 }
  0xf0   : > { %v487_v49 = vadd.f32 %v486_v47, %v382_v41  ;;  %v507_v50 = vadd.f32 %v506_v48, %v402_v45  ;;  %v488_v51 = vpop.f32.mrb[1].mxu0  ;;  %v508_v52 = vpop.f32.mrb[1].mxu1 }
  0xf1   : > { %v489_v53 = vadd.f32 %v488_v51, %v382_v41  ;;  %v509_v54 = vadd.f32 %v508_v52, %v402_v45  ;;  %v490_v55 = vpop.f32.mrb[2].mxu0  ;;  %v510_v56 = vpop.f32.mrb[2].mxu1  ;;  %v1058_v45 = vld [vmem:[%s1320_s3 + $0x18] sm:$0xff]  }
  0xf2   : > { %v533_v57 = vmax.f32 %v507_v50, 0.0  ;;  %v491_v58 = vadd.f32 %v490_v55, %v387_v43  ;;  %v511_v59 = vadd.f32 %v510_v56, %v407_v46  ;;  %v492_v60 = vpop.f32.mrb[3].mxu0  ;;  %v512_v61 = vpop.f32.mrb[3].mxu1  ;;  %v525_v2 = vmax.f32 %v487_v49, 0.0 }
  0xf3   : > { %v534_v62 = vmax.f32 %v509_v54, 0.0  ;;  %v493_v63 = vadd.f32 %v492_v60, %v387_v43  ;;  %v513_v1 = vadd.f32 %v512_v61, %v407_v46  ;;  %v526_v5 = vmax.f32 %v489_v53, 0.0  ;;  %v1056_v43 = vld [vmem:[%s1320_s3 + $0x8] sm:$0xff]   ;;  %v552_v46 = vpop.permute.xlu0 %551  ;;  %v557_v50 = vpop.permute.xlu1 %556 }
  0xf4   : > { %v527_v3 = vmax.f32 %v491_v58, 0.0  ;;  %v535_v4 = vmax.f32 %v511_v59, 0.0 }
  0xf5   : > { %v528_v6 = vmax.f32 %v493_v63, 0.0  ;;  %v536_v7 = vmax.f32 %v513_v1, 0.0 }
  0xf6   : > { %v541_v10 = vpack.c.bf16 %v527_v3, %v525_v2  ;;  %v545_v11 = vpack.c.bf16 %v535_v4, %v533_v57 }
  0xf7   : > { %v542_v12 = vpack.c.bf16 %v528_v6, %v526_v5  ;;  %v546_v13 = vpack.c.bf16 %v536_v7, %v534_v62  ;;  %v496_v14 = vpop.f32.mrb[4].mxu0  ;;  %v516_v15 = vpop.f32.mrb[4].mxu1 }
  0xf8   : > { %v497_v16 = vadd.f32 %v496_v14, %v392_v42  ;;  %v517_v17 = vadd.f32 %v516_v15, %v412_v8  ;;  %v498_v18 = vpop.f32.mrb[5].mxu0  ;;  %v518_v19 = vpop.f32.mrb[5].mxu1 }
  0xf9   : > { %v499_v20 = vadd.f32 %v498_v18, %v392_v42  ;;  %v519_v21 = vadd.f32 %v518_v19, %v412_v8  ;;  %v500_v22 = vpop.f32.mrb[6].mxu0  ;;  %v520_v23 = vpop.f32.mrb[6].mxu1  ;;  %622 = vmatprep.subr.bf16.mxu1 %v542_v12  ;;  %v1055_v42 = vld [vmem:[%s1320_s3] sm:$0xff]  }
  0xfa   : > { %v501_v24 = vadd.f32 %v500_v22, %v397_v44  ;;  %v521_v25 = vadd.f32 %v520_v23, %v417_v9  ;;  %v502_v26 = vpop.f32.mrb[7].mxu0  ;;  %v522_v27 = vpop.f32.mrb[7].mxu1  ;;  %623 = vmatpush1.bf16.msra.mxu1 %v541_v10  ;;  %v529_v30 = vmax.f32 %v497_v16, 0.0  ;;  %v537_v31 = vmax.f32 %v517_v17, 0.0 }
  0xfb   : > { %v503_v28 = vadd.f32 %v502_v26, %v397_v44  ;;  %v523_v29 = vadd.f32 %v522_v27, %v417_v9  ;;  %v530_v34 = vmax.f32 %v499_v20, 0.0  ;;  %v538_v35 = vmax.f32 %v519_v21, 0.0  ;;  %v1057_v44 = vld [vmem:[%s1320_s3 + $0x10] sm:$0xff]   ;;  %v562_v61 = vpop.permute.xlu0 %561  ;;  %v567_v3 = vpop.permute.xlu1 %566 }
  0xfc   : > { %v531_v32 = vmax.f32 %v501_v24, 0.0  ;;  %v539_v33 = vmax.f32 %v521_v25, 0.0 }
  0xfd   : > { %v532_v36 = vmax.f32 %v503_v28, 0.0  ;;  %v540_v37 = vmax.f32 %v523_v29, 0.0 }
  0xfe   : > { %v543_v38 = vpack.c.bf16 %v531_v32, %v529_v30  ;;  %v547_v39 = vpack.c.bf16 %v539_v33, %v537_v31 }
  0xff   : > { %v544_v40 = vpack.c.bf16 %v532_v36, %v530_v34  ;;  %v548_v41 = vpack.c.bf16 %v540_v37, %v538_v35  ;;  %v572_v14 = vpop.permute.xlu0 %571  ;;  %v577_v19 = vpop.permute.xlu1 %576 }
 0x101   : > { %624 = vmatprep.subr.bf16.mxu1 %v544_v40 }
 0x102   : > { %625 = vmatpush1.bf16.msra.mxu1 %v543_v38 }
 0x103   : > { %626 = vmatprep.subr.bf16.mxu1 %v546_v13  ;;  %v582_v30 = vpop.permute.xlu0 %581  ;;  %v587_v35 = vpop.permute.xlu1 %586 }
 0x106   : > { %627 = vmatpush1.bf16.msra.mxu1 %v545_v11 }
 0x107   : > { %628 = vmatprep.subr.bf16.mxu1 %v548_v41 }
 0x10a   : > { %629 = vmatpush1.bf16.msra.mxu1 %v547_v39 }
 0x10d   : > { %1004 = vmatmul.mubr.msk.bf16.vlgmr.msra.gmra.mrb[8].mxu1 %vm609_vm1, %v1055_v42 }
 0x10e   : > { %664 = vmatprep.mubr.bf16.mxu1 %v1087_v0 }
 0x115   : > { %1005 = vmatmul.mubr.msk.bf16.gmra.mrb[12].mxu1 %vm609_vm1, %v1056_v43 }
 0x116   : > { %674 = vmatprep.mubr.bf16.mxu1 %v1087_v0 }
 0x11d   : > { %1006 = vmatmul.mubr.msk.bf16.gmra.mrb[16].mxu1 %vm609_vm1, %v1057_v44 }
 0x11e   : > { %684 = vmatprep.mubr.bf16.mxu1 %v1087_v0 }
 0x125   : > { %1007 = vmatmul.mubr.msk.bf16.gmra.mrb[20].mxu1 %vm609_vm1, %v1058_v45 }
 0x1e0   : > { %v656_v47 = vpop.f32.mrb[8].mxu1 }
 0x1e1   : > { %v657_v48 = vadd.f32 %v656_v47, %v552_v46  ;;  %v658_v49 = vpop.f32.mrb[9].mxu1  ;;  %v1059_v47 = vld [vmem:[%s1322_s5] sm:$0xff]  }
 0x1e2   : > { %v659_v51 = vadd.f32 %v658_v49, %v552_v46  ;;  %v660_v52 = vpop.f32.mrb[10].mxu1  ;;  %v1061_v49 = vld [vmem:[%s1322_s5 + $0x10] sm:$0xff]  }
 0x1e3   : > { %v661_v53 = vadd.f32 %v660_v52, %v557_v50  ;;  %v662_v54 = vpop.f32.mrb[11].mxu1  ;;  %v695_v56 = vmax.f32 %v657_v48, 0.0  ;;  %v1060_v48 = vld [vmem:[%s1322_s5 + $0x8] sm:$0xff]  }
 0x1e4   : > { %v663_v55 = vadd.f32 %v662_v54, %v557_v50  ;;  %v696_v58 = vmax.f32 %v659_v51, 0.0  ;;  %v1062_v50 = vld [vmem:[%s1322_s5 + $0x18] sm:$0xff]   ;;  %v722_v51 = vpop.permute.xlu0 %721 }
 0x1e5   : > { %v697_v57 = vmax.f32 %v661_v53, 0.0 }
 0x1e6   : > { %v698_v59 = vmax.f32 %v663_v55, 0.0 }
 0x1e7   : > { %v711_v60 = vpack.c.bf16 %v697_v57, %v695_v56 }
 0x1e8   : > { %v712_v62 = vpack.c.bf16 %v698_v59, %v696_v58  ;;  %v666_v63 = vpop.f32.mrb[12].mxu1 }
 0x1e9   : > { %v667_v1 = vadd.f32 %v666_v63, %v562_v61  ;;  %v668_v2 = vpop.f32.mrb[13].mxu1 }
 0x1ea   : > { %v669_v4 = vadd.f32 %v668_v2, %v562_v61  ;;  %v670_v5 = vpop.f32.mrb[14].mxu1  ;;  %791 = vmatprep.subr.bf16.mxu0 %v712_v62 }
 0x1eb   : > { %v671_v6 = vadd.f32 %v670_v5, %v567_v3  ;;  %v672_v7 = vpop.f32.mrb[15].mxu1  ;;  %792 = vmatpush1.bf16.msra.mxu0 %v711_v60  ;;  %v699_v9 = vmax.f32 %v667_v1, 0.0  ;;  %v732_v1 = vpop.permute.xlu0 %731 }
 0x1ec   : > { %v673_v8 = vadd.f32 %v672_v7, %v567_v3  ;;  %v700_v11 = vmax.f32 %v669_v4, 0.0 }
 0x1ed   : > { %v701_v10 = vmax.f32 %v671_v6, 0.0 }
 0x1ee   : > { %v702_v12 = vmax.f32 %v673_v8, 0.0 }
 0x1ef   : > { %v713_v13 = vpack.c.bf16 %v701_v10, %v699_v9 }
 0x1f0   : > { %v714_v15 = vpack.c.bf16 %v702_v12, %v700_v11  ;;  %v676_v16 = vpop.f32.mrb[16].mxu1 }
 0x1f1   : > { %v677_v17 = vadd.f32 %v676_v16, %v572_v14  ;;  %v678_v18 = vpop.f32.mrb[17].mxu1 }
 0x1f2   : > { %v679_v20 = vadd.f32 %v678_v18, %v572_v14  ;;  %v680_v21 = vpop.f32.mrb[18].mxu1  ;;  %793 = vmatprep.subr.bf16.mxu0 %v714_v15  ;;  %v742_v15 = vpop.permute.xlu0 %741 }
 0x1f3   : > { %v681_v22 = vadd.f32 %v680_v21, %v577_v19  ;;  %v682_v23 = vpop.f32.mrb[19].mxu1  ;;  %794 = vmatpush1.bf16.msra.mxu0 %v713_v13  ;;  %v703_v25 = vmax.f32 %v677_v17, 0.0 }
 0x1f4   : > { %v683_v24 = vadd.f32 %v682_v23, %v577_v19  ;;  %v704_v27 = vmax.f32 %v679_v20, 0.0 }
 0x1f5   : > { %v705_v26 = vmax.f32 %v681_v22, 0.0 }
 0x1f6   : > { %v706_v28 = vmax.f32 %v683_v24, 0.0 }
 0x1f7   : > { %v715_v29 = vpack.c.bf16 %v705_v26, %v703_v25 }
 0x1f8   : > { %v716_v31 = vpack.c.bf16 %v706_v28, %v704_v27  ;;  %v686_v32 = vpop.f32.mrb[20].mxu1 }
 0x1f9   : > { %v687_v33 = vadd.f32 %v686_v32, %v582_v30  ;;  %v688_v34 = vpop.f32.mrb[21].mxu1 }
 0x1fa   : > { %v689_v36 = vadd.f32 %v688_v34, %v582_v30  ;;  %v690_v37 = vpop.f32.mrb[22].mxu1  ;;  %795 = vmatprep.subr.bf16.mxu0 %v716_v31 }
 0x1fb   : > { %v691_v38 = vadd.f32 %v690_v37, %v587_v35  ;;  %v692_v39 = vpop.f32.mrb[23].mxu1  ;;  %796 = vmatpush1.bf16.msra.mxu0 %v715_v29  ;;  %v707_v41 = vmax.f32 %v687_v33, 0.0  ;;  %v752_v29 = vpop.permute.xlu0 %751 }
 0x1fc   : > { %v693_v40 = vadd.f32 %v692_v39, %v587_v35  ;;  %v708_v43 = vmax.f32 %v689_v36, 0.0 }
 0x1fd   : > { %v709_v42 = vmax.f32 %v691_v38, 0.0 }
 0x1fe   : > { %v710_v44 = vmax.f32 %v693_v40, 0.0 }
 0x1ff   : > { %v717_v45 = vpack.c.bf16 %v709_v42, %v707_v41 }
 0x200   : > { %v718_v46 = vpack.c.bf16 %v710_v44, %v708_v43 }
 0x202   : > { %797 = vmatprep.subr.bf16.mxu0 %v718_v46 }
 0x203   : > { %798 = vmatpush1.bf16.msra.mxu0 %v717_v45 }
 0x206   : > { %1012 = vmatmul.mubr.msk.bf16.vlgmr.msra.gmra.mrb[8].mxu0 %vm609_vm1, %v1059_v47 }
 0x207   : > { %833 = vmatprep.mubr.bf16.mxu0 %v1087_v0 }
 0x20e   : > { %1013 = vmatmul.mubr.msk.bf16.gmra.mrb[12].mxu0 %vm609_vm1, %v1060_v48 }
 0x20f   : > { %843 = vmatprep.mubr.bf16.mxu0 %v1087_v0 }
 0x216   : > { %1014 = vmatmul.mubr.msk.bf16.gmra.mrb[16].mxu0 %vm609_vm1, %v1061_v49 }
 0x217   : > { %853 = vmatprep.mubr.bf16.mxu0 %v1087_v0  ;;  %v727_v0 = vpop.permute.xlu1 %726 }
 0x21b   : > { %v737_v5 = vpop.permute.xlu1 %736 }
 0x21e   : > { %1015 = vmatmul.mubr.msk.bf16.gmra.mrb[20].mxu0 %vm609_vm1, %v1062_v50 }
 0x21f   : > { %v747_v19 = vpop.permute.xlu1 %746 }
 0x223   : > { %v757_v33 = vpop.permute.xlu1 %756 }
 0x2d9   : > { %v825_v52 = vpop.f32.mrb[8].mxu0 }
 0x2da   : > { %v826_v53 = vadd.f32 %v825_v52, %v722_v51  ;;  %v827_v54 = vpop.f32.mrb[9].mxu0 }
 0x2db   : > { %v828_v55 = vadd.f32 %v827_v54, %v722_v51  ;;  %v829_v56 = vpop.f32.mrb[10].mxu0 }
 0x2dc   : > { %v864_v57 = vmax.f32 %v826_v53, 0.0  ;;  %v830_v58 = vadd.f32 %v829_v56, %v727_v0  ;;  %v831_v59 = vpop.f32.mrb[11].mxu0 }
 0x2dd   : > { %v865_v60 = vmax.f32 %v828_v55, 0.0  ;;  %v832_v61 = vadd.f32 %v831_v59, %v727_v0 }
 0x2de   : > { %880 = vst [vmem:[%s1290_s8] sm:$0xff] %v864_v57  ;;  %v866_v62 = vmax.f32 %v830_v58, 0.0 }
 0x2df   : > { %881 = vst [vmem:[%s1290_s8 + $0x8] sm:$0xff] %v865_v60  ;;  %v867_v63 = vmax.f32 %v832_v61, 0.0 }
 0x2e0   : > { %882 = vst [vmem:[%s1290_s8 + $0x10] sm:$0xff] %v866_v62 }
 0x2e1   : > { %883 = vst [vmem:[%s1290_s8 + $0x18] sm:$0xff] %v867_v63  ;;  %v835_v2 = vpop.f32.mrb[12].mxu0 }
 0x2e2   : > { %v836_v3 = vadd.f32 %v835_v2, %v732_v1  ;;  %v837_v4 = vpop.f32.mrb[13].mxu0 }
 0x2e3   : > { %v838_v6 = vadd.f32 %v837_v4, %v732_v1  ;;  %v839_v7 = vpop.f32.mrb[14].mxu0 }
 0x2e4   : > { %v868_v8 = vmax.f32 %v836_v3, 0.0  ;;  %v840_v9 = vadd.f32 %v839_v7, %v737_v5  ;;  %v841_v10 = vpop.f32.mrb[15].mxu0 }
 0x2e5   : > { %v869_v11 = vmax.f32 %v838_v6, 0.0  ;;  %v842_v12 = vadd.f32 %v841_v10, %v737_v5 }
 0x2e6   : > { %884 = vst [vmem:[%s1290_s8 + $0x20] sm:$0xff] %v868_v8  ;;  %v870_v13 = vmax.f32 %v840_v9, 0.0 }
 0x2e7   : > { %885 = vst [vmem:[%s1290_s8 + $0x28] sm:$0xff] %v869_v11  ;;  %v871_v14 = vmax.f32 %v842_v12, 0.0 }
 0x2e8   : > { %886 = vst [vmem:[%s1290_s8 + $0x30] sm:$0xff] %v870_v13 }
 0x2e9   : > { %887 = vst [vmem:[%s1290_s8 + $0x38] sm:$0xff] %v871_v14  ;;  %v845_v16 = vpop.f32.mrb[16].mxu0 }
 0x2ea   : > { %v846_v17 = vadd.f32 %v845_v16, %v742_v15  ;;  %v847_v18 = vpop.f32.mrb[17].mxu0 }
 0x2eb   : > { %v848_v20 = vadd.f32 %v847_v18, %v742_v15  ;;  %v849_v21 = vpop.f32.mrb[18].mxu0 }
 0x2ec   : > { %v872_v22 = vmax.f32 %v846_v17, 0.0  ;;  %v850_v23 = vadd.f32 %v849_v21, %v747_v19  ;;  %v851_v24 = vpop.f32.mrb[19].mxu0 }
 0x2ed   : > { %v873_v25 = vmax.f32 %v848_v20, 0.0  ;;  %v852_v26 = vadd.f32 %v851_v24, %v747_v19 }
 0x2ee   : > { %888 = vst [vmem:[%s1290_s8 + $0x40] sm:$0xff] %v872_v22  ;;  %v874_v27 = vmax.f32 %v850_v23, 0.0 }
 0x2ef   : > { %889 = vst [vmem:[%s1290_s8 + $0x48] sm:$0xff] %v873_v25  ;;  %v875_v28 = vmax.f32 %v852_v26, 0.0 }
 0x2f0   : > { %890 = vst [vmem:[%s1290_s8 + $0x50] sm:$0xff] %v874_v27 }
 0x2f1   : > { %891 = vst [vmem:[%s1290_s8 + $0x58] sm:$0xff] %v875_v28  ;;  %v855_v30 = vpop.f32.mrb[20].mxu0 }
 0x2f2   : > { %v856_v31 = vadd.f32 %v855_v30, %v752_v29  ;;  %v857_v32 = vpop.f32.mrb[21].mxu0 }
 0x2f3   : > { %v858_v34 = vadd.f32 %v857_v32, %v752_v29  ;;  %v859_v35 = vpop.f32.mrb[22].mxu0 }
 0x2f4   : > { %v876_v36 = vmax.f32 %v856_v31, 0.0  ;;  %v860_v37 = vadd.f32 %v859_v35, %v757_v33  ;;  %v861_v38 = vpop.f32.mrb[23].mxu0 }
 0x2f5   : > { %v877_v39 = vmax.f32 %v858_v34, 0.0  ;;  %v862_v40 = vadd.f32 %v861_v38, %v757_v33 }
 0x2f6   : > { %892 = vst [vmem:[%s1290_s8 + $0x60] sm:$0xff] %v876_v36  ;;  %v878_v41 = vmax.f32 %v860_v37, 0.0 }
 0x2f7   : > { %893 = vst [vmem:[%s1290_s8 + $0x68] sm:$0xff] %v877_v39  ;;  %v879_v42 = vmax.f32 %v862_v40, 0.0 }
 0x2f8   : > { %894 = vst [vmem:[%s1290_s8 + $0x70] sm:$0xff] %v878_v41 }
 0x2f9   : > { %895 = vst [vmem:[%s1290_s8 + $0x78] sm:$0xff] %v879_v42 }
 0x2fa PF: > { %s17_s26 = sadd.s32 1, %s1085_s26   ;;  %s1325_s24 = smov %s1081_s25 }
 0x2fb   : > { %p14_p5 = scmp.ge.s32.totalorder %s17_s26, 4   ;;  %s1326_s25 = smov %s1328_s27 }
 0x2fd   :  { %16 = sbr.rel (!%p14_p5) target bundleno = 2 (0x2), region = 78 }

</bundles_post_ra>
